<compile_context>
chip_gen: v7x
topology: tpu7x:2x2x1
jax: 0.10.0
libtpu: 0.0.40
codegen_flags: <defaults>
</compile_context>

<pallas_src>
import math
import functools

import jax
import jax.numpy as jnp
from jax.experimental import pallas as pl
from jax.experimental.pallas import tpu as pltpu


def _round_up(v, m):
    return ((v + m - 1) // m) * m


# ----------------------------- Pallas kernel -----------------------------

def _decoder_kernel(z_ref, x_ref, w1_ref, b1_ref, w2_ref, b2_ref, wl_ref, b3_ref,
                    px_ref, logp_ref, *, alphabet, sa):
    f32 = jnp.float32
    sa_pad = px_ref.shape[-1]

    # h1 = relu(z @ W1 + b1)         (bf16 MXU operands, f32 accumulation)
    z_bf = z_ref[...].astype(jnp.bfloat16)
    h1 = jnp.dot(z_bf, w1_ref[...], preferred_element_type=f32) + b1_ref[...]
    h1 = jnp.maximum(h1, 0.0)

    # h2 = sigmoid(h1 @ W2 + b2)
    h2 = jnp.dot(h1.astype(jnp.bfloat16), w2_ref[...],
                 preferred_element_type=f32) + b2_ref[...]
    h2 = jax.nn.sigmoid(h2)

    # h3 = h2 @ (W_out * l) + b3 * l  -- ONE fused matmul over all positions.
    # wl_ref has the dictionary / sparsity mask / temperature folded in and is
    # zero-padded on the last axis up to a 128-lane multiple.
    h3 = jnp.dot(h2.astype(jnp.bfloat16), wl_ref[...],
                 preferred_element_type=f32) + b3_ref[...]            # (TB, SA_pad)

    # ---- per-position softmax over groups of `alphabet` consecutive lanes.
    # Segmented all-reduces use a lane-roll butterfly: cost O(log2 alphabet),
    # independent of sequence length, no per-position masks. ----
    lane = jax.lax.broadcasted_iota(jnp.int32, (1, sa_pad), 1)
    pos = lane % alphabet                     # lane position inside its group
    valid = lane < sa                         # lanes beyond seq*alphabet are pad

    def shift_within(v, s):
        # out[i] = v[group_start(i) + (pos(i) + s) % alphabet]
        # i.e. a cyclic shift by `s` lanes *within* each aligned group; valid
        # lanes only ever read lanes of their own group.
        hi = pltpu.roll(v, sa_pad - s, 1)       # out[i] = v[i + s]
        lo = pltpu.roll(v, alphabet - s, 1)     # out[i] = v[i + s - alphabet]
        return jnp.where(pos < alphabet - s, hi, lo)

    def seg_allreduce(v, combine):
        # Exact per-group all-reduce (result broadcast to every lane of the
        # group) via binary decomposition of the group width: works for any
        # alphabet size, ~2*ceil(log2 alphabet) roll passes.
        res, res_cov = None, 0
        d, d_cov = v, 1
        bits = alphabet
        while bits:
            if bits & 1:
                if res is None:
                    res, res_cov = d, d_cov
                else:
                    res = combine(res, shift_within(d, res_cov))
                    res_cov += d_cov
            bits >>= 1
            if bits:
                d = combine(d, shift_within(d, d_cov))
                d_cov *= 2
        return res

    m = seg_allreduce(h3, jnp.maximum)                 # per-position max (group const)
    e = jnp.where(valid, jnp.exp(h3 - m), 0.0)         # one full-width EUP pass
    den = seg_allreduce(e, jnp.add)                    # per-position sum of exp
    den = jnp.where(valid, den, 1.0)

    # single lane-dense store; pad lanes hold exactly 0
    px_ref[...] = e / den

    # log-likelihood: full-width multiply + one reduce.  x is zero in the pad
    # lanes and finite there in logsm, so no slice / mask is needed.
    logsm = (h3 - m) - jnp.log(den)
    lp = jnp.sum(x_ref[...].astype(f32) * logsm, axis=-1, keepdims=True)   # (TB, 1)
    logp_ref[...] = jnp.broadcast_to(lp, logp_ref.shape)                   # lane-dense


# ----------------------------- parameter setup -----------------------------

def xavier_normal(key, shape):
    fan_in, fan_out = shape
    std = math.sqrt(2.0 / (fan_in + fan_out))
    return std * jax.random.normal(key, shape, dtype=jnp.float32)


def init_params(key, latent_dim, sequence_length, alphabet_size, h1_dim, h2_dim,
                cw_inner_dimension, nb_patterns, nb_diseases=0, nb_features=0):
    ks = jax.random.split(key, 4)
    in_dim = latent_dim + nb_features * nb_diseases
    p = {
        "mu_W1": xavier_normal(ks[0], (in_dim, h1_dim)),
        "logsigma_W1": jnp.full((in_dim, h1_dim), -5.0, jnp.float32),
        "mu_b1": jnp.full((h1_dim,), 0.1, jnp.float32),
        "logsigma_b1": jnp.full((h1_dim,), -5.0, jnp.float32),
        "mu_W2": xavier_normal(ks[1], (h1_dim, h2_dim)),
        "logsigma_W2": jnp.full((h1_dim, h2_dim), -5.0, jnp.float32),
        "mu_b2": jnp.full((h2_dim,), 0.1, jnp.float32),
        "logsigma_b2": jnp.full((h2_dim,), -5.0, jnp.float32),
        "mu_W3": xavier_normal(ks[2], (h2_dim, sequence_length * cw_inner_dimension)),
        "logsigma_W3": jnp.full((h2_dim, sequence_length * cw_inner_dimension), -5.0, jnp.float32),
        "mu_b3": jnp.full((alphabet_size * sequence_length,), 0.1, jnp.float32),
        "logsigma_b3": jnp.full((alphabet_size * sequence_length,), -5.0, jnp.float32),
        "mu_S": jnp.zeros((h2_dim // nb_patterns, sequence_length), jnp.float32),
        "logsigma_S": jnp.full((h2_dim // nb_patterns, sequence_length), -5.0, jnp.float32),
        "mu_C": xavier_normal(ks[3], (cw_inner_dimension, alphabet_size)),
        "logsigma_C": jnp.full((cw_inner_dimension, alphabet_size), -5.0, jnp.float32),
        "mu_l": jnp.ones((1,), jnp.float32),
        "logsigma_l": jnp.full((1,), -5.0, jnp.float32),
    }
    return p


def sample_diag_gaussian(key, mu, logsigma):
    eps = jax.random.normal(key, mu.shape, dtype=mu.dtype)
    return mu + jnp.exp(logsigma) * eps


def _build_folded_weights(params, key, *, sequence_length, alphabet_size,
                          h1_dim, h2_dim, cw_inner_dimension, nb_patterns):
    """Sample the reparameterized weights and fold the (batch-independent)
    dictionary + temperature into the output layer.  Plain JAX glue."""
    SA = sequence_length * alphabet_size
    keys = jax.random.split(key, 9)
    W1 = sample_diag_gaussian(keys[0], params["mu_W1"], params["logsigma_W1"])
    b1 = sample_diag_gaussian(keys[1], params["mu_b1"], params["logsigma_b1"])
    W2 = sample_diag_gaussian(keys[2], params["mu_W2"], params["logsigma_W2"])
    b2 = sample_diag_gaussian(keys[3], params["mu_b2"], params["logsigma_b2"])
    W3 = sample_diag_gaussian(keys[4], params["mu_W3"], params["logsigma_W3"])
    b3 = sample_diag_gaussian(keys[5], params["mu_b3"], params["logsigma_b3"])
    S = sample_diag_gaussian(keys[6], params["mu_S"], params["logsigma_S"])
    C = sample_diag_gaussian(keys[7], params["mu_C"], params["logsigma_C"])
    l = sample_diag_gaussian(keys[8], params["mu_l"], params["logsigma_l"])

    # hasDictionary=True path of the reference module.
    S_sig = jax.nn.sigmoid(jnp.tile(S, (nb_patterns, 1)))                 # (h2, seq)
    W3v = W3.reshape(h2_dim * sequence_length, cw_inner_dimension)
    W_out = jnp.dot(W3v, C).reshape(h2_dim, sequence_length, alphabet_size)
    W_out = (W_out * S_sig[:, :, None]).reshape(h2_dim, SA)              # (h2, seq*alpha)

    # temperature softplus(l), folded into the output weights / bias.
    l_val = jax.nn.softplus(l[0])
    Wl = W_out * l_val
    b3l = (b3 * l_val).reshape(1, SA)
    return W1, b1, W2, b2, Wl, b3l


# ----------------------------- forward wrapper -----------------------------

def stochastic_sparse_decoder_forward(params, z, x, key, *, sequence_length,
                                      alphabet_size, h1_dim, h2_dim,
                                      cw_inner_dimension, nb_patterns,
                                      batch_tile=512):
    B, latent_dim = z.shape
    SA = sequence_length * alphabet_size
    SA_pad = _round_up(SA, 128)

    W1, b1, W2, b2, Wl, b3l = _build_folded_weights(
        params, key, sequence_length=sequence_length, alphabet_size=alphabet_size,
        h1_dim=h1_dim, h2_dim=h2_dim, cw_inner_dimension=cw_inner_dimension,
        nb_patterns=nb_patterns)

    # pad the seq*alpha axis to a 128-lane multiple (lane-dense px stores)
    Wl_p = jnp.pad(Wl, ((0, 0), (0, SA_pad - SA))).astype(jnp.bfloat16)
    b3l_p = jnp.pad(b3l, ((0, 0), (0, SA_pad - SA)))
    W1_bf = W1.astype(jnp.bfloat16)
    W2_bf = W2.astype(jnp.bfloat16)
    b1_2d = b1.reshape(1, h1_dim)
    b2_2d = b2.reshape(1, h2_dim)

    # ---- batch tiling: budget the double-buffered streams against VMEM
    # (v7x has 64 MiB physical) and give the v7x megacore >= 2 grid steps ----
    vmem_limit = 64 * 1024 * 1024
    resident = (W1_bf.size * 2 + W2_bf.size * 2 + Wl_p.size * 2
                + (b1_2d.size + b2_2d.size + b3l_p.size) * 4)
    b8 = _round_up(B, 8)
    TB = min(_round_up(batch_tile, 8), b8)
    if TB >= b8 and b8 >= 16:                      # split batch across 2 v7x TCs
        TB = _round_up(pl.cdiv(b8, 2), 8)
    per_row = latent_dim * 4 + SA_pad * 2 + SA_pad * 4 + 128 * 4
    stream_budget = max(vmem_limit - 2 * resident - (8 << 20), 2 << 20)
    while TB > 8 and 2 * TB * per_row > stream_budget:
        TB = max(8, _round_up(TB // 2, 8))
    B_pad = _round_up(B, TB)

    z_p = jnp.pad(z, ((0, B_pad - B), (0, 0)))
    # x padded to SA_pad (zero pad lanes) and narrowed to bf16 (one-hot is exact)
    x_p = jnp.pad(x.reshape(B, SA),
                  ((0, B_pad - B), (0, SA_pad - SA))).astype(jnp.bfloat16)

    kernel = functools.partial(_decoder_kernel, alphabet=alphabet_size, sa=SA)

    def row_spec(cols):            # batch-tiled operands
        return pl.BlockSpec((TB, cols), lambda i: (i, 0))

    def w_spec(rows, cols):
        # Weights stay VMEM-resident across the batch grid (constant block index).
        # TODO(synk): request single buffering (pl.Buffered(1)) for these once
        # validated, to reclaim the redundant second weight buffer on v7x.
        return pl.BlockSpec((rows, cols), lambda i: (0, 0))

    px_pad, logp = pl.pallas_call(
        kernel,
        out_shape=(jax.ShapeDtypeStruct((B_pad, SA_pad), jnp.float32),
                   jax.ShapeDtypeStruct((B_pad, 128), jnp.float32)),
        grid=(B_pad // TB,),
        in_specs=[
            row_spec(latent_dim),              # z
            row_spec(SA_pad),                  # x (bf16 one-hot, padded)
            w_spec(latent_dim, h1_dim),        # W1 (bf16)
            w_spec(1, h1_dim),                 # b1
            w_spec(h1_dim, h2_dim),            # W2 (bf16)
            w_spec(1, h2_dim),                 # b2
            w_spec(h2_dim, SA_pad),            # (W3@C)*sigmoid(S)*softplus(l), padded (bf16)
            w_spec(1, SA_pad),                 # b3 * softplus(l), padded
        ],
        out_specs=(row_spec(SA_pad), row_spec(128)),
        compiler_params=pltpu.CompilerParams(
            dimension_semantics=("parallel",),
            vmem_limit_bytes=vmem_limit),
    )(z_p, x_p, W1_bf, b1_2d, W2_bf, b2_2d, Wl_p, b3l_p)

    px_z = px_pad[:B, :SA].reshape(B, sequence_length, alphabet_size)
    logpx_z = logp[:B, 0]

    return (px_z, logpx_z,
            params["mu_W1"], params["logsigma_W1"], params["mu_b1"], params["logsigma_b1"],
            params["mu_W2"], params["logsigma_W2"], params["mu_b2"], params["logsigma_b2"],
            params["mu_W3"], params["logsigma_W3"], params["mu_b3"], params["logsigma_b3"],
            params["mu_S"], params["logsigma_S"], params["mu_C"], params["logsigma_C"],
            params["mu_l"], params["logsigma_l"])


# ----------------------------- main -----------------------------

if __name__ == "__main__":
    # module config (small, consistent with constructor constraints)
    latent_dim = 8
    sequence_length = 8
    alphabet_size = 4
    h1_dim = 16
    h2_dim = 16
    nb_patterns = 2
    cw_inner_dimension = 8
    batch = 2
    # mu_sparse / sigma_sparse / hasTemperature flags are unused by forward();
    # hasDictionary=True path implemented.
    # TODO(synk): opt.dropout > 0 branch (nn.Dropout) not implemented (dropout=0 path).

    root = jax.random.PRNGKey(0)
    k_param, k_z, k_x, k_sample = jax.random.split(root, 4)

    params = init_params(k_param, latent_dim, sequence_length, alphabet_size,
                         h1_dim, h2_dim, cw_inner_dimension, nb_patterns)

    z = jax.random.normal(k_z, (batch, latent_dim), dtype=jnp.float32)
    labels = jax.random.randint(k_x, (batch, sequence_length), 0, alphabet_size)
    x = jax.nn.one_hot(labels, alphabet_size, dtype=jnp.float32)

    outs = stochastic_sparse_decoder_forward(
        params, z, x, k_sample,
        sequence_length=sequence_length, alphabet_size=alphabet_size,
        h1_dim=h1_dim, h2_dim=h2_dim,
        cw_inner_dimension=cw_inner_dimension, nb_patterns=nb_patterns)

    px_z, logpx_z = outs[0], outs[1]
    jax.block_until_ready(px_z)
    jax.block_until_ready(logpx_z)

    # pure-JAX f32 reference (same sampled weights) for a sanity check
    W1, b1, W2, b2, Wl, b3l = _build_folded_weights(
        params, k_sample, sequence_length=sequence_length,
        alphabet_size=alphabet_size, h1_dim=h1_dim, h2_dim=h2_dim,
        cw_inner_dimension=cw_inner_dimension, nb_patterns=nb_patterns)
    h1r = jax.nn.relu(z @ W1 + b1)
    h2r = jax.nn.sigmoid(h1r @ W2 + b2)
    h3r = (h2r @ Wl + b3l).reshape(batch, sequence_length, alphabet_size)
    px_ref = jax.nn.softmax(h3r, -1)
    logp_ref = jnp.sum(x * jax.nn.log_softmax(h3r, -1), axis=(-1, -2))

    assert px_z.shape == (batch, sequence_length, alphabet_size)
    assert logpx_z.shape == (batch,)
    assert bool(jnp.all(jnp.isfinite(px_z)))
    assert bool(jnp.all(jnp.isfinite(logpx_z)))
    # softmax rows sum to 1 (exact up to f32 rounding, independent of weight dtype)
    assert jnp.allclose(px_z.sum(-1), 1.0, atol=1e-5)
    # bf16 MXU operands in the kernel => loose tolerance vs the f32 reference
    assert jnp.allclose(px_z, px_ref, atol=3e-2)
    assert jnp.allclose(logpx_z, logp_ref, atol=2e-1)

    print("KERNEL_OK")
</pallas_src>

<mosaic_0001>
module attributes {stable_mosaic.version = 11 : i64} {
  func.func @_decoder_kernel(%arg0: i32, %arg1: memref<8x8xf32, #tpu.memory_space<vmem>>, %arg2: memref<8x128xbf16, #tpu.memory_space<vmem>>, %arg3: memref<8x16xbf16, #tpu.memory_space<vmem>>, %arg4: memref<1x16xf32, #tpu.memory_space<vmem>>, %arg5: memref<16x16xbf16, #tpu.memory_space<vmem>>, %arg6: memref<1x16xf32, #tpu.memory_space<vmem>>, %arg7: memref<16x128xbf16, #tpu.memory_space<vmem>>, %arg8: memref<1x128xf32, #tpu.memory_space<vmem>>, %arg9: memref<8x128xf32, #tpu.memory_space<vmem>>, %arg10: memref<8x128xf32, #tpu.memory_space<vmem>>) attributes {dimension_semantics = [#tpu.dimension_semantics<parallel>], iteration_bounds = array<i64: 1>, scalar_prefetch = 0 : i64, scratch_operands = 0 : i64, tpu.core_type = #tpu.core_type<tc>, window_params = [{transform_indices = @transform_0, window_bounds = array<i64: 8, 8>}, {transform_indices = @transform_1, window_bounds = array<i64: 8, 128>}, {pipeline_mode = #tpu.pipeline_mode<synchronous>, transform_indices = @transform_2, window_bounds = array<i64: 8, 16>}, {pipeline_mode = #tpu.pipeline_mode<synchronous>, transform_indices = @transform_3, window_bounds = array<i64: 1, 16>}, {pipeline_mode = #tpu.pipeline_mode<synchronous>, transform_indices = @transform_4, window_bounds = array<i64: 16, 16>}, {pipeline_mode = #tpu.pipeline_mode<synchronous>, transform_indices = @transform_5, window_bounds = array<i64: 1, 16>}, {pipeline_mode = #tpu.pipeline_mode<synchronous>, transform_indices = @transform_6, window_bounds = array<i64: 16, 128>}, {pipeline_mode = #tpu.pipeline_mode<synchronous>, transform_indices = @transform_7, window_bounds = array<i64: 1, 128>}, {transform_indices = @transform_8, window_bounds = array<i64: 8, 128>}, {transform_indices = @transform_9, window_bounds = array<i64: 8, 128>}]} {
    %c0 = arith.constant 0 : index
    %c0_0 = arith.constant 0 : index
    %0 = vector.load %arg1[%c0, %c0_0] : memref<8x8xf32, #tpu.memory_space<vmem>>, vector<8x8xf32>
    %1 = arith.truncf %0 : vector<8x8xf32> to vector<8x8xbf16>
    %c0_1 = arith.constant 0 : index
    %c0_2 = arith.constant 0 : index
    %2 = vector.load %arg3[%c0_1, %c0_2] : memref<8x16xbf16, #tpu.memory_space<vmem>>, vector<8x16xbf16>
    %cst = arith.constant dense<0.000000e+00> : vector<8x16xf32>
    %3 = tpu.matmul %1, %2, %cst {dimension_numbers = #tpu.dot_dimension_numbers<[1], [0], [0], [1], [0, 0, 1, 1], [], []>} : vector<8x8xbf16>, vector<8x16xbf16>, vector<8x16xf32> -> vector<8x16xf32>
    %c0_3 = arith.constant 0 : index
    %c0_4 = arith.constant 0 : index
    %4 = vector.load %arg4[%c0_3, %c0_4] : memref<1x16xf32, #tpu.memory_space<vmem>>, vector<1x16xf32>
    %5 = vector.broadcast %4 : vector<1x16xf32> to vector<8x16xf32>
    %6 = arith.addf %3, %5 : vector<8x16xf32>
    %cst_5 = arith.constant 0.000000e+00 : f32
    %7 = vector.broadcast %cst_5 : f32 to vector<8x16xf32>
    %8 = arith.maximumf %6, %7 : vector<8x16xf32>
    %9 = arith.truncf %8 : vector<8x16xf32> to vector<8x16xbf16>
    %c0_6 = arith.constant 0 : index
    %c0_7 = arith.constant 0 : index
    %10 = vector.load %arg5[%c0_6, %c0_7] : memref<16x16xbf16, #tpu.memory_space<vmem>>, vector<16x16xbf16>
    %cst_8 = arith.constant dense<0.000000e+00> : vector<8x16xf32>
    %11 = tpu.matmul %9, %10, %cst_8 {dimension_numbers = #tpu.dot_dimension_numbers<[1], [0], [0], [1], [0, 0, 1, 1], [], []>} : vector<8x16xbf16>, vector<16x16xbf16>, vector<8x16xf32> -> vector<8x16xf32>
    %c0_9 = arith.constant 0 : index
    %c0_10 = arith.constant 0 : index
    %12 = vector.load %arg6[%c0_9, %c0_10] : memref<1x16xf32, #tpu.memory_space<vmem>>, vector<1x16xf32>
    %13 = vector.broadcast %12 : vector<1x16xf32> to vector<8x16xf32>
    %14 = arith.addf %11, %13 : vector<8x16xf32>
    %15 = arith.negf %14 : vector<8x16xf32>
    %16 = math.exp %15 : vector<8x16xf32>
    %cst_11 = arith.constant 1.000000e+00 : f32
    %17 = vector.broadcast %cst_11 : f32 to vector<8x16xf32>
    %18 = arith.addf %17, %16 : vector<8x16xf32>
    %19 = arith.divf %17, %18 : vector<8x16xf32>
    %20 = arith.truncf %19 : vector<8x16xf32> to vector<8x16xbf16>
    %c0_12 = arith.constant 0 : index
    %c0_13 = arith.constant 0 : index
    %21 = vector.load %arg7[%c0_12, %c0_13] : memref<16x128xbf16, #tpu.memory_space<vmem>>, vector<16x128xbf16>
    %cst_14 = arith.constant dense<0.000000e+00> : vector<8x128xf32>
    %22 = tpu.matmul %20, %21, %cst_14 {dimension_numbers = #tpu.dot_dimension_numbers<[1], [0], [0], [1], [0, 0, 1, 1], [], []>} : vector<8x16xbf16>, vector<16x128xbf16>, vector<8x128xf32> -> vector<8x128xf32>
    %c0_15 = arith.constant 0 : index
    %c0_16 = arith.constant 0 : index
    %23 = vector.load %arg8[%c0_15, %c0_16] : memref<1x128xf32, #tpu.memory_space<vmem>>, vector<1x128xf32>
    %24 = vector.broadcast %23 : vector<1x128xf32> to vector<8x128xf32>
    %25 = arith.addf %22, %24 : vector<8x128xf32>
    %26 = tpu.iota {dimensions = array<i32: 1>} : vector<1x128xi32>
    %c4_i32 = arith.constant 4 : i32
    %c0_i32 = arith.constant 0 : i32
    %27 = arith.cmpi eq, %c4_i32, %c0_i32 : i32
    %c1_i32 = arith.constant 1 : i32
    %28 = arith.select %27, %c1_i32, %c4_i32 : i32
    %29 = vector.broadcast %28 : i32 to vector<1x128xi32>
    %30 = arith.remsi %26, %29 : vector<1x128xi32>
    %c0_i32_17 = arith.constant 0 : i32
    %31 = vector.broadcast %c0_i32_17 : i32 to vector<1x128xi32>
    %32 = arith.cmpi ne, %30, %31 : vector<1x128xi32>
    %c0_i32_18 = arith.constant 0 : i32
    %33 = vector.broadcast %c0_i32_18 : i32 to vector<1x128xi32>
    %34 = arith.cmpi slt, %30, %33 : vector<1x128xi32>
    %c0_i32_19 = arith.constant 0 : i32
    %35 = arith.cmpi slt, %28, %c0_i32_19 : i32
    %36 = vector.broadcast %35 : i1 to vector<1x128xi1>
    %37 = vector.broadcast %36 : vector<1x128xi1> to vector<1x128xi1>
    %38 = arith.xori %34, %37 : vector<1x128xi1>
    %39 = arith.andi %38, %32 : vector<1x128xi1>
    %40 = vector.broadcast %28 : i32 to vector<1x128xi32>
    %41 = arith.addi %30, %40 : vector<1x128xi32>
    %42 = arith.select %39, %41, %30 : vector<1x128xi1>, vector<1x128xi32>
    %c32_i32 = arith.constant 32 : i32
    %43 = vector.broadcast %c32_i32 : i32 to vector<1x128xi32>
    %44 = arith.cmpi slt, %26, %43 : vector<1x128xi32>
    %c127_i32 = arith.constant 127 : i32
    %45 = tpu.dynamic_rotate %25 by %c127_i32 dim 1 : vector<8x128xf32>, i32 -> vector<8x128xf32>
    %c3_i32 = arith.constant 3 : i32
    %46 = tpu.dynamic_rotate %25 by %c3_i32 dim 1 : vector<8x128xf32>, i32 -> vector<8x128xf32>
    %c3_i32_20 = arith.constant 3 : i32
    %47 = vector.broadcast %c3_i32_20 : i32 to vector<1x128xi32>
    %48 = arith.cmpi slt, %42, %47 : vector<1x128xi32>
    %49 = vector.shape_cast %48 : vector<1x128xi1> to vector<1x128xi1>
    %50 = vector.broadcast %49 : vector<1x128xi1> to vector<8x128xi1>
    %51 = arith.select %50, %45, %46 : vector<8x128xi1>, vector<8x128xf32>
    %52 = arith.maximumf %25, %51 : vector<8x128xf32>
    %c126_i32 = arith.constant 126 : i32
    %53 = tpu.dynamic_rotate %52 by %c126_i32 dim 1 : vector<8x128xf32>, i32 -> vector<8x128xf32>
    %c2_i32 = arith.constant 2 : i32
    %54 = tpu.dynamic_rotate %52 by %c2_i32 dim 1 : vector<8x128xf32>, i32 -> vector<8x128xf32>
    %c2_i32_21 = arith.constant 2 : i32
    %55 = vector.broadcast %c2_i32_21 : i32 to vector<1x128xi32>
    %56 = arith.cmpi slt, %42, %55 : vector<1x128xi32>
    %57 = vector.shape_cast %56 : vector<1x128xi1> to vector<1x128xi1>
    %58 = vector.broadcast %57 : vector<1x128xi1> to vector<8x128xi1>
    %59 = arith.select %58, %53, %54 : vector<8x128xi1>, vector<8x128xf32>
    %60 = arith.maximumf %52, %59 : vector<8x128xf32>
    %61 = arith.subf %25, %60 : vector<8x128xf32>
    %62 = math.exp %61 : vector<8x128xf32>
    %cst_22 = arith.constant 0.000000e+00 : f32
    %63 = vector.shape_cast %44 : vector<1x128xi1> to vector<1x128xi1>
    %64 = vector.broadcast %63 : vector<1x128xi1> to vector<8x128xi1>
    %65 = vector.broadcast %cst_22 : f32 to vector<8x128xf32>
    %66 = arith.select %64, %62, %65 : vector<8x128xi1>, vector<8x128xf32>
    %c127_i32_23 = arith.constant 127 : i32
    %67 = tpu.dynamic_rotate %66 by %c127_i32_23 dim 1 : vector<8x128xf32>, i32 -> vector<8x128xf32>
    %c3_i32_24 = arith.constant 3 : i32
    %68 = tpu.dynamic_rotate %66 by %c3_i32_24 dim 1 : vector<8x128xf32>, i32 -> vector<8x128xf32>
    %c3_i32_25 = arith.constant 3 : i32
    %69 = vector.broadcast %c3_i32_25 : i32 to vector<1x128xi32>
    %70 = arith.cmpi slt, %42, %69 : vector<1x128xi32>
    %71 = vector.shape_cast %70 : vector<1x128xi1> to vector<1x128xi1>
    %72 = vector.broadcast %71 : vector<1x128xi1> to vector<8x128xi1>
    %73 = arith.select %72, %67, %68 : vector<8x128xi1>, vector<8x128xf32>
    %74 = arith.addf %66, %73 : vector<8x128xf32>
    %c126_i32_26 = arith.constant 126 : i32
    %75 = tpu.dynamic_rotate %74 by %c126_i32_26 dim 1 : vector<8x128xf32>, i32 -> vector<8x128xf32>
    %c2_i32_27 = arith.constant 2 : i32
    %76 = tpu.dynamic_rotate %74 by %c2_i32_27 dim 1 : vector<8x128xf32>, i32 -> vector<8x128xf32>
    %c2_i32_28 = arith.constant 2 : i32
    %77 = vector.broadcast %c2_i32_28 : i32 to vector<1x128xi32>
    %78 = arith.cmpi slt, %42, %77 : vector<1x128xi32>
    %79 = vector.shape_cast %78 : vector<1x128xi1> to vector<1x128xi1>
    %80 = vector.broadcast %79 : vector<1x128xi1> to vector<8x128xi1>
    %81 = arith.select %80, %75, %76 : vector<8x128xi1>, vector<8x128xf32>
    %82 = arith.addf %74, %81 : vector<8x128xf32>
    %cst_29 = arith.constant 1.000000e+00 : f32
    %83 = vector.shape_cast %44 : vector<1x128xi1> to vector<1x128xi1>
    %84 = vector.broadcast %83 : vector<1x128xi1> to vector<8x128xi1>
    %85 = vector.broadcast %cst_29 : f32 to vector<8x128xf32>
    %86 = arith.select %84, %82, %85 : vector<8x128xi1>, vector<8x128xf32>
    %87 = arith.divf %66, %86 : vector<8x128xf32>
    %c0_30 = arith.constant 0 : index
    %c0_31 = arith.constant 0 : index
    %88 = vector.load %arg9[%c0_30, %c0_31] : memref<8x128xf32, #tpu.memory_space<vmem>>, vector<8x128xf32>
    tpu.vector_store %arg9[%c0_30, %c0_31], %87 {strides = array<i32>} : memref<8x128xf32, #tpu.memory_space<vmem>>, vector<8x128xf32>,
    %89 = arith.subf %25, %60 : vector<8x128xf32>
    %90 = math.log %86 : vector<8x128xf32>
    %91 = arith.subf %89, %90 : vector<8x128xf32>
    %c0_32 = arith.constant 0 : index
    %c0_33 = arith.constant 0 : index
    %92 = vector.load %arg2[%c0_32, %c0_33] : memref<8x128xbf16, #tpu.memory_space<vmem>>, vector<8x128xbf16>
    %93 = arith.extf %92 : vector<8x128xbf16> to vector<8x128xf32>
    %94 = arith.mulf %93, %91 : vector<8x128xf32>
    %cst_34 = arith.constant dense<0.000000e+00> : vector<8xf32>
    %95 = vector.multi_reduction <add>, %94, %cst_34 [1] : vector<8x128xf32> to vector<8xf32>
    %96 = vector.shape_cast %95 : vector<8xf32> to vector<8x1xf32>
    %97 = vector.shape_cast %96 : vector<8x1xf32> to vector<8x1xf32>
    %98 = vector.broadcast %97 : vector<8x1xf32> to vector<8x128xf32>
    %c0_35 = arith.constant 0 : index
    %c0_36 = arith.constant 0 : index
    %99 = vector.load %arg10[%c0_35, %c0_36] : memref<8x128xf32, #tpu.memory_space<vmem>>, vector<8x128xf32>
    tpu.vector_store %arg10[%c0_35, %c0_36], %98 {strides = array<i32>} : memref<8x128xf32, #tpu.memory_space<vmem>>, vector<8x128xf32>,
    return
  }
  func.func @transform_0(%arg0: i32) -> (i32, i32) {
    %c0_i32 = arith.constant 0 : i32
    %c0_i32_0 = arith.constant 0 : i32
    return %arg0, %c0_i32 : i32, i32
  }
  func.func @transform_1(%arg0: i32) -> (i32, i32) {
    %c0_i32 = arith.constant 0 : i32
    %c0_i32_0 = arith.constant 0 : i32
    return %arg0, %c0_i32 : i32, i32
  }
  func.func @transform_2(%arg0: i32) -> (i32, i32) {
    %c0_i32 = arith.constant 0 : i32
    %c0_i32_0 = arith.constant 0 : i32
    %c0_i32_1 = arith.constant 0 : i32
    return %c0_i32, %c0_i32_0 : i32, i32
  }
  func.func @transform_3(%arg0: i32) -> (i32, i32) {
    %c0_i32 = arith.constant 0 : i32
    %c0_i32_0 = arith.constant 0 : i32
    %c0_i32_1 = arith.constant 0 : i32
    return %c0_i32, %c0_i32_0 : i32, i32
  }
  func.func @transform_4(%arg0: i32) -> (i32, i32) {
    %c0_i32 = arith.constant 0 : i32
    %c0_i32_0 = arith.constant 0 : i32
    %c0_i32_1 = arith.constant 0 : i32
    return %c0_i32, %c0_i32_0 : i32, i32
  }
  func.func @transform_5(%arg0: i32) -> (i32, i32) {
    %c0_i32 = arith.constant 0 : i32
    %c0_i32_0 = arith.constant 0 : i32
    %c0_i32_1 = arith.constant 0 : i32
    return %c0_i32, %c0_i32_0 : i32, i32
  }
  func.func @transform_6(%arg0: i32) -> (i32, i32) {
    %c0_i32 = arith.constant 0 : i32
    %c0_i32_0 = arith.constant 0 : i32
    %c0_i32_1 = arith.constant 0 : i32
    return %c0_i32, %c0_i32_0 : i32, i32
  }
  func.func @transform_7(%arg0: i32) -> (i32, i32) {
    %c0_i32 = arith.constant 0 : i32
    %c0_i32_0 = arith.constant 0 : i32
    %c0_i32_1 = arith.constant 0 : i32
    return %c0_i32, %c0_i32_0 : i32, i32
  }
  func.func @transform_8(%arg0: i32) -> (i32, i32) {
    %c0_i32 = arith.constant 0 : i32
    %c0_i32_0 = arith.constant 0 : i32
    return %arg0, %c0_i32 : i32, i32
  }
  func.func @transform_9(%arg0: i32) -> (i32, i32) {
    %c0_i32 = arith.constant 0 : i32
    %c0_i32_0 = arith.constant 0 : i32
    return %arg0, %c0_i32 : i32, i32
  }
}

</mosaic_0001>

<bundles_post_ra>
// kernel: tpu_custom_call.1
= control target key start
LH: loop header
LB: loop body
LE: loop exit
PB: predicated region body
PF: predicated region fallthrough
CT: control target
= control target key end

     0   :  { %15 = vsyncpa [#allocation3], 0  ;;  %s922_s0 = inlined_call_operand.hbm [shape: f32[8,8], index: 0, kind: input, shape index: {}]   ;;  %s923_s1 = inlined_call_operand.hbm [shape: bf16[8,128], index: 1, kind: input, shape index: {}]   ;;  %s924_s2 = inlined_call_operand.hbm [shape: bf16[8,16], index: 2, kind: input, shape index: {}]   ;;  %s925_s3 = inlined_call_operand.hbm [shape: f32[1,16], index: 3, kind: input, shape index: {}]   ;;  %s926_s4 = inlined_call_operand.hbm [shape: bf16[16,16], index: 4, kind: input, shape index: {}]   ;;  %s927_s5 = inlined_call_operand.hbm [shape: f32[1,16], index: 5, kind: input, shape index: {}]   ;;  %s928_s6 = inlined_call_operand.hbm [shape: bf16[16,128], index: 6, kind: input, shape index: {}]   ;;  %s929_s7 = inlined_call_operand.hbm [shape: f32[1,128], index: 7, kind: input, shape index: {}]   ;;  %s930_s8 = inlined_call_operand.hbm [shape: f32[8,128], index: 8, kind: output, shape index: {0}]   ;;  %s931_s9 = inlined_call_operand.hbm [shape: f32[8,128], index: 9, kind: output, shape index: {1}]  }
   0x1   :  { %16 = vsyncpa [#allocation6], 0 }
   0x2   :  { %17 = vsyncpa [#allocation9], 0 }
   0x3   :  { %18 = vsyncpa [#allocation12], 0 }
   0x4   :  { %19 = vsyncpa [#allocation15], 0 }
   0x5   :  { %20 = vsyncpa [#allocation4], 0 }
   0x6   :  { %21 = vsyncpa [#allocation18], 0  ;;  %s709_s30 = smov [#allocation5]   ;;  %s710_s11 = smov [#allocation8]  }
   0x7   :  { %s38_s10 = sshll.u32 %s709_s30, 4  ;;  %s58_s12 = sshll.u32 %s710_s11, 4  ;;  %s39_s10 = int_to_ptr.vmem [resolvable:$true] %s38_s10  ;;  %s59_s12 = int_to_ptr.vmem [resolvable:$true] %s58_s12 }
   0x8   :  { %s475_s15 = scalar_lea.hbm %s923_s1, 64 }
   0x9   :  { %p476_p0 = scmp.ne.s32.totalorder %s923_s1, %s475_s15  ;;  %p479_p1 = scmp.lt.u32.totalorder %s475_s15, %s923_s1 }
   0xb   :  { %p481_p2 = pnand %p479_p1, %p476_p0 }
   0xd   :  { %484 = shalt.err (!%p481_p2)
}
   0xe   :  { %s485_s20 = scalar_lea.vmem %s39_s10, 64  ;;  %p490_p4 = scmp.lt.s32.totalorder %s39_s10, %s39_s10 }
   0xf   :  { %p486_p3 = scmp.ne.s32.totalorder %s39_s10, %s485_s20  ;;  %p491_p5 = scmp.lt.s32.totalorder %s485_s20, %s485_s20 }
  0x11   :  { %p492_p6 = por %p491_p5, %p490_p4 }
  0x13   :  { %p493_p7 = pnand %p492_p6, %p486_p3 }
  0x15   :  { %496 = shalt.err (!%p493_p7)
}
  0x16   :  { %41 = dma.hbm_to_vmem [thread:$0]  %s923_s1, 64, %s39_s10, [#allocation6]  }
  0x17   :  { %s497_s25 = scalar_lea.hbm %s925_s3, 16 }
  0x18   :  { %p498_p8 = scmp.ne.s32.totalorder %s925_s3, %s497_s25  ;;  %p501_p9 = scmp.lt.u32.totalorder %s497_s25, %s925_s3 }
  0x1a   :  { %p503_p10 = pnand %p501_p9, %p498_p8 }
  0x1c   :  { %506 = shalt.err (!%p503_p10)
}
  0x1d   :  { %s507_s30 = scalar_lea.vmem %s59_s12, 16  ;;  %s511_s11 = scalar_lea.vmem %s59_s12, 32 }
  0x1e   :  { %p508_p11 = scmp.ne.s32.totalorder %s59_s12, %s507_s30  ;;  %p512_p12 = scmp.lt.s32.totalorder %s59_s12, %s59_s12 }
  0x1f   :  { %p513_p13 = scmp.lt.s32.totalorder %s511_s11, %s507_s30 }
  0x21   :  { %p514_p0 = por %p513_p13, %p512_p12 }
  0x23   :  { %p515_p1 = pnand %p514_p0, %p508_p11 }
  0x25   :  { %518 = shalt.err (!%p515_p1)
}
  0x26   :  { %61 = dma.hbm_to_vmem [thread:$0]  %s925_s3, 16, %s59_s12, [#allocation9]  }
  0x27   :  { %s711_s13 = smov [#allocation11]   ;;  %s712_s15 = smov [#allocation2]  }
  0x28   :  { %s80_s14 = sshll.u32 %s711_s13, 4  ;;  %s28_s16 = sshll.u32 %s712_s15, 4  ;;  %s81_s14 = int_to_ptr.vmem [resolvable:$true] %s80_s14  ;;  %s29_s16 = int_to_ptr.vmem [resolvable:$true] %s28_s16 }
  0x29   :  { %s519_s19 = scalar_lea.hbm %s927_s5, 16 }
  0x2a   :  { %p520_p2 = scmp.ne.s32.totalorder %s927_s5, %s519_s19  ;;  %p523_p3 = scmp.lt.u32.totalorder %s519_s19, %s927_s5 }
  0x2c   :  { %p525_p4 = pnand %p523_p3, %p520_p2 }
  0x2e   :  { %528 = shalt.err (!%p525_p4)
}
  0x2f   :  { %s529_s3 = scalar_lea.vmem %s81_s14, 16  ;;  %s533_s12 = scalar_lea.vmem %s81_s14, 32 }
  0x30   :  { %p530_p5 = scmp.ne.s32.totalorder %s81_s14, %s529_s3  ;;  %p534_p6 = scmp.lt.s32.totalorder %s81_s14, %s81_s14 }
  0x31   :  { %p535_p7 = scmp.lt.s32.totalorder %s533_s12, %s529_s3 }
  0x33   :  { %p536_p8 = por %p535_p7, %p534_p6 }
  0x35   :  { %p537_p9 = pnand %p536_p8, %p530_p5 }
  0x37   :  { %540 = shalt.err (!%p537_p9)
}
  0x38   :  { %83 = dma.hbm_to_vmem [thread:$0]  %s927_s5, 16, %s81_s14, [#allocation12]  }
  0x39   :  { %s541_s28 = scalar_lea.hbm %s922_s0, 128 }
  0x3a   :  { %p542_p10 = scmp.ne.s32.totalorder %s922_s0, %s541_s28  ;;  %p545_p11 = scmp.lt.u32.totalorder %s541_s28, %s922_s0 }
  0x3c   :  { %p547_p12 = pnand %p545_p11, %p542_p10 }
  0x3e   :  { %550 = shalt.err (!%p547_p12)
}
  0x3f   :  { %s551_s10 = scalar_lea.vmem %s29_s16, 128  ;;  %p556_p0 = scmp.lt.s32.totalorder %s29_s16, %s29_s16 }
  0x40   :  { %p552_p13 = scmp.ne.s32.totalorder %s29_s16, %s551_s10  ;;  %p557_p1 = scmp.lt.s32.totalorder %s551_s10, %s551_s10 }
  0x42   :  { %p558_p2 = por %p557_p1, %p556_p0 }
  0x44   :  { %p559_p3 = pnand %p558_p2, %p552_p13 }
  0x46   :  { %562 = shalt.err (!%p559_p3)
}
  0x47   :  { %31 = dma.hbm_to_vmem [thread:$0]  %s922_s0, 128, %s29_s16, [#allocation3]  }
  0x48   :  { %s713_s14 = smov [#allocation7]   ;;  %s714_s17 = smov [#allocation10]  }
  0x49   :  { %s48_s15 = sshll.u32 %s713_s14, 4  ;;  %s67_s18 = sshll.u32 %s714_s17, 4  ;;  %s49_s15 = int_to_ptr.vmem [resolvable:$true] %s48_s15  ;;  %s825_s18 = int_to_ptr.vmem [resolvable:$true] %s67_s18 }
  0x4a   :  { %s563_s21 = scalar_lea.hbm %s924_s2, 64 }
  0x4b   :  { %p564_p4 = scmp.ne.s32.totalorder %s924_s2, %s563_s21  ;;  %p567_p5 = scmp.lt.u32.totalorder %s563_s21, %s924_s2 }
  0x4d   :  { %p569_p6 = pnand %p567_p5, %p564_p4 }
  0x4f   :  { %572 = shalt.err (!%p569_p6)
}
  0x50   :  { %s573_s0 = scalar_lea.vmem %s49_s15, 64  ;;  %p578_p8 = scmp.lt.s32.totalorder %s49_s15, %s49_s15 }
  0x51   :  { %p574_p7 = scmp.ne.s32.totalorder %s49_s15, %s573_s0  ;;  %p579_p9 = scmp.lt.s32.totalorder %s573_s0, %s573_s0 }
  0x53   :  { %p580_p10 = por %p579_p9, %p578_p8 }
  0x55   :  { %p581_p11 = pnand %p580_p10, %p574_p7 }
  0x57   :  { %584 = shalt.err (!%p581_p11)
}
  0x58   :  { %51 = dma.hbm_to_vmem [thread:$0]  %s924_s2, 64, %s49_s15, [#allocation6]  }
  0x59   :  { %s585_s27 = scalar_lea.hbm %s926_s4, 128 }
  0x5a   :  { %p586_p12 = scmp.ne.s32.totalorder %s926_s4, %s585_s27  ;;  %p589_p13 = scmp.lt.u32.totalorder %s585_s27, %s926_s4 }
  0x5c   :  { %p591_p0 = pnand %p589_p13, %p586_p12 }
  0x5e   :  { %594 = shalt.err (!%p591_p0)
}
  0x5f   :  { %s595_s1 = scalar_lea.vmem %s825_s18, 128  ;;  %p600_p2 = scmp.lt.s32.totalorder %s825_s18, %s825_s18 }
  0x60   :  { %p596_p1 = scmp.ne.s32.totalorder %s825_s18, %s595_s1  ;;  %p601_p3 = scmp.lt.s32.totalorder %s595_s1, %s595_s1 }
  0x62   :  { %p602_p4 = por %p601_p3, %p600_p2 }
  0x64   :  { %p603_p5 = pnand %p602_p4, %p596_p1 }
  0x66   :  { %606 = shalt.err (!%p603_p5)
}
  0x67   :  { %s715_s2 = smov 64   ;;  %s716_s10 = smov 4  }
  0x68   :  { %73 = dma.hbm_to_vmem [thread:$0]  %s926_s4, 128, %s825_s18, [#allocation9], %s715_s2, %s715_s2, %s716_s10  }
  0x69   :  { %s717_s14 = smov [#allocation13]   ;;  %s718_s17 = smov [#allocation14]  }
  0x6a   :  { %s89_s15 = sshll.u32 %s717_s14, 4  ;;  %s102_s19 = sshll.u32 %s718_s17, 4  ;;  %s90_s15 = int_to_ptr.vmem [resolvable:$true] %s89_s15  ;;  %s103_s19 = int_to_ptr.vmem [resolvable:$true] %s102_s19 }
  0x6b   :  { %s607_s22 = scalar_lea.hbm %s928_s6, 128 }
  0x6c   :  { %p608_p6 = scmp.ne.s32.totalorder %s928_s6, %s607_s22  ;;  %p611_p7 = scmp.lt.u32.totalorder %s607_s22, %s928_s6 }
  0x6e   :  { %p613_p8 = pnand %p611_p7, %p608_p6 }
  0x70   :  { %616 = shalt.err (!%p613_p8)
}
  0x71   :  { %s617_s4 = scalar_lea.vmem %s90_s15, 128  ;;  %p622_p10 = scmp.lt.s32.totalorder %s90_s15, %s90_s15 }
  0x72   :  { %p618_p9 = scmp.ne.s32.totalorder %s90_s15, %s617_s4  ;;  %p623_p11 = scmp.lt.s32.totalorder %s617_s4, %s617_s4 }
  0x74   :  { %p624_p12 = por %p623_p11, %p622_p10 }
  0x76   :  { %p625_p13 = pnand %p624_p12, %p618_p9 }
  0x78   :  { %628 = shalt.err (!%p625_p13)
}
  0x79   :  { %95 = dma.hbm_to_vmem [thread:$0]  %s928_s6, 128, %s90_s15, [#allocation12], %s715_s2, %s715_s2, %s716_s10  }
  0x7a   :  { %s629_s26 = scalar_lea.hbm %s929_s7, 16 }
  0x7b   :  { %p630_p0 = scmp.ne.s32.totalorder %s929_s7, %s629_s26  ;;  %p633_p1 = scmp.lt.u32.totalorder %s629_s26, %s929_s7 }
  0x7d   :  { %p635_p2 = pnand %p633_p1, %p630_p0 }
  0x7f   :  { %638 = shalt.err (!%p635_p2)
}
  0x80   :  { %s639_s11 = scalar_lea.vmem %s103_s19, 16  ;;  %s643_s1 = scalar_lea.vmem %s103_s19, 32 }
  0x81   :  { %p640_p3 = scmp.ne.s32.totalorder %s103_s19, %s639_s11  ;;  %p644_p4 = scmp.lt.s32.totalorder %s103_s19, %s103_s19 }
  0x82   :  { %p645_p5 = scmp.lt.s32.totalorder %s643_s1, %s639_s11 }
  0x84   :  { %p646_p6 = por %p645_p5, %p644_p4 }
  0x86   :  { %p647_p7 = pnand %p646_p6, %p640_p3 }
  0x88   :  { %650 = shalt.err (!%p647_p7)
}
  0x89   :  { %105 = dma.hbm_to_vmem [thread:$0]  %s929_s7, 16, %s103_s19, [#allocation15]  }
  0x8a   :  { %695 = dma.done.wait [#allocation3], 128  }
  0x8b   :  { %696 = vsyncadd [#allocation3], 4294967168 }
  0x8c   :  { %697 = dma.done.wait [#allocation6], 128  }
  0x8d   :  { %698 = vsyncadd [#allocation6], 4294967168 }
  0x8e   :  { %699 = dma.done.wait [#allocation9], 144  }
  0x8f   :  { %700 = vsyncadd [#allocation9], 4294967152 }
  0x90   :  { %701 = dma.done.wait [#allocation12], 144  }
  0x91   :  { %702 = vsyncadd [#allocation12], 4294967152 }
  0x92   :  { %703 = dma.done.wait [#allocation15], 16  }
  0x93   :  { %704 = vsyncadd [#allocation15], 4294967280  ;;  %v719_v0 = vmov 0.0   ;;  %vm720_vm0 = vmmov 0   ;;  %vm145_vm1 = vcmask 1043456   ;;  %v131_v2 = vld [vmem:[#allocation2] sm:$0xff]  ;;  %v315_v32 = vlaneseq }
  0x94   :  { %427 = vmatprep.subr.bf16.mxu0 %v719_v0  ;;  %429 = vmatprep.mubr.msk.bf16.mxu0 %vm720_vm0, %v719_v0  ;;  %v133_v1 = vld [vmem:[#allocation7] sm:$0xf]  ;;  %v132_v4 = vpack.c.bf16 %v131_v2, %v131_v2  ;;  %vm141_vm2 = vcmask 64512   ;;  %v463_v5 = vld [vmem:[#allocation10] sm:$0xff]   ;;  %v412_v6 = vld [vmem:[#allocation8] ss:$0 sm:$0xff] }
  0x95   :  { %433 = vmatprep.subr.bf16.mxu1 %v719_v0  ;;  %435 = vmatprep.mubr.msk.bf16.mxu1 %vm720_vm0, %v719_v0  ;;  %v147_v3 = vsel %vm145_vm1, %v133_v1, 0  ;;  %vm206_vm3 = vcmask 130048   ;;  %v464_v14 = vld [vmem:[#allocation13] sm:$0xff]   ;;  %v414_v15 = vld [vmem:[#allocation11] ss:$0 sm:$0xff]  ;;  %s721_s7 = smov 127  }
  0x96   :  { %428 = vmatpush3.bf16.msra.mxu0 %v147_v3  ;;  %434 = vmatpush3.bf16.msra.mxu1 %v463_v5  ;;  %v418_v26 = vld [vmem:[#allocation14] ss:$0 sm:$0xff]  ;;  %s722_s10 = smov 3   ;;  %v316_v33 = vand.u32 127, %v315_v32  ;;  %s723_s5 = smov 126  }
  0x97   :  { %439 = vmatprep.subr.bf16.mxu0 %v719_v0  ;;  %s724_s13 = smov 2   ;;  %v373_v58 = vld [vmem:[#allocation5] sm:$0xf]  ;;  %s725_s14 = smov [#allocation16]  }
  0x98   :  { %v321_v34 = vand.u32 3, %v316_v33  ;;  %vm329_vm6 = vcmp.lt.s32.totalorder %v316_v33, 32  ;;  %v374_v63 = vunpack.c.l.bf16 %v373_v58  ;;  %s385_s15 = sshll.u32 %s725_s14, 4  ;;  %s386_s15 = int_to_ptr.vmem [resolvable:$true] %s385_s15 }
  0x99   :  { %430 = vmatmul.mubr.msk.bf16.vlgmr.msra.gmra.mrb[0].mxu0 %vm141_vm2, %v132_v4  ;;  %s651_s17 = scalar_lea.vmem %s386_s15, 128  ;;  %p656_p9 = scmp.lt.s32.totalorder %s386_s15, %s386_s15 }
  0x9a   :  { %441 = vmatprep.mubr.msk.bf16.mxu0 %vm720_vm0, %v719_v0  ;;  %440 = vmatpush3.bf16.msra.mxu0 %v464_v14  ;;  %vm882_vm4 = vcmp.lt.s32.totalorder %v321_v34, 3  ;;  %vm888_vm5 = vcmp.lt.s32.totalorder %v321_v34, 2  ;;  %p652_p8 = scmp.ne.s32.totalorder %s386_s15, %s651_s17  ;;  %p657_p10 = scmp.lt.s32.totalorder %s651_s17, %s651_s17 }
  0x9c   :  { %p658_p11 = por %p657_p10, %p656_p9 }
  0x9e   :  { %p659_p12 = pnand %p658_p11, %p652_p8 }
 0x16c   :  { %v183_v7 = vpop.f32.mrb[0].mxu0 }
 0x16d   :  { %v184_v8 = vadd.f32 %v412_v6, %v183_v7  ;;  %v431_v9 = vpop.f32.mrb[1].mxu0 }
 0x16e   :  { %v186_v10 = vpop.f32.mrb[2].mxu0 }
 0x16f   :  { %v189_v11 = vmax.f32 %v184_v8, 0.0  ;;  %v432_v12 = vpop.f32.mrb[3].mxu0 }
 0x171   :  { %v190_v13 = vpack.c.bf16 %v189_v11, %v189_v11 }
 0x173   :  { %436 = vmatmul.mubr.msk.bf16.vlgmr.msra.gmra.mrb[0].mxu1 %vm206_vm3, %v190_v13 }
 0x246   :  { %v244_v16 = vpop.f32.mrb[0].mxu1 }
 0x247   :  { %v245_v17 = vadd.f32 %v414_v15, %v244_v16  ;;  %v437_v18 = vpop.f32.mrb[1].mxu1 }
 0x248   :  { %v247_v19 = vpop.f32.mrb[2].mxu1 }
 0x249   :  { %v417_v20 = vmul.f32 -1.442695, %v245_v17  ;;  %v438_v21 = vpop.f32.mrb[3].mxu1 }
 0x24b   :  { %465 = vpow2.f32 %v417_v20 }
 0x255   :  { %v466_v22 = vpop.eup %465 }
 0x256   :  { %v253_v23 = vadd.f32 1.0, %v466_v22 }
 0x258   :  { %467 = vrcp.f32 %v253_v23 }
 0x262   :  { %v468_v24 = vpop.eup %467 }
 0x263   :  { %v256_v25 = vpack.c.bf16 %v468_v24, %v468_v24 }
 0x265   :  { %442 = vmatmul.mubr.msk.bf16.vlgmr.msra.gmra.mrb[4].mxu0 %vm206_vm3, %v256_v25 }
 0x338   :  { %v309_v27 = vpop.f32.mrb[4].mxu0 }
 0x339   :  { %v310_v28 = vadd.f32 %v418_v26, %v309_v27  ;;  %v443_v29 = vpop.f32.mrb[5].mxu0 }
 0x33a   :  { %v312_v30 = vpop.f32.mrb[6].mxu0 }
 0x33b   :  { %330 = vrot.lane.b32.xlu0 %v310_v28, %s721_s7  ;;  %v444_v31 = vpop.f32.mrb[7].mxu0 }
 0x33f   :  { %332 = vrot.lane.b32.xlu0 %v310_v28, %s722_s10 }
 0x3ad   :  { %v331_v35 = vpop.permute.xlu0 %330 }
 0x3b1   :  { %v333_v37 = vpop.permute.xlu0 %332 }
 0x3b2   :  { %v337_v38 = vsel %vm882_vm4, %v331_v35, %v333_v37 }
 0x3b3   :  { %v338_v39 = vmax.f32 %v310_v28, %v337_v38 }
 0x3b5   :  { %339 = vrot.lane.b32.xlu1 %v338_v39, %s723_s5 }
 0x3b9   :  { %341 = vrot.lane.b32.xlu1 %v338_v39, %s724_s13 }
 0x427   :  { %v340_v40 = vpop.permute.xlu1 %339 }
 0x42b   :  { %v342_v42 = vpop.permute.xlu1 %341 }
 0x42c   :  { %v346_v43 = vsel %vm888_vm5, %v340_v40, %v342_v42 }
 0x42d   :  { %v347_v44 = vmax.f32 %v338_v39, %v346_v43 }
 0x42f   :  { %v348_v45 = vsub.f32 %v310_v28, %v347_v44 }
 0x431   :  { %v349_v46 = vmul.f32 1.442695, %v348_v45 }
 0x433   :  { %469 = vpow2.f32 %v349_v46 }
 0x43d   :  { %v470_v47 = vpop.eup %469 }
 0x43e   :  { %v353_v48 = vsel %vm329_vm6, %v470_v47, 0.0 }
 0x43f   :  { %356 = vrot.lane.b32.xlu1 %v353_v48, %s722_s10  ;;  %354 = vrot.lane.b32.xlu0 %v353_v48, %s721_s7 }
 0x4b1   :  { %v357_v49 = vpop.permute.xlu1 %356  ;;  %v355_v50 = vpop.permute.xlu0 %354 }
 0x4b2   :  { %v358_v51 = vsel %vm882_vm4, %v355_v50, %v357_v49 }
 0x4b3   :  { %v359_v52 = vadd.f32 %v358_v51, %v353_v48 }
 0x4b5   :  { %362 = vrot.lane.b32.xlu1 %v359_v52, %s724_s13  ;;  %360 = vrot.lane.b32.xlu0 %v359_v52, %s723_s5 }
 0x527   :  { %v363_v53 = vpop.permute.xlu1 %362  ;;  %v361_v54 = vpop.permute.xlu0 %360 }
 0x528   :  { %v364_v55 = vsel %vm888_vm5, %v361_v54, %v363_v53 }
 0x529   :  { %v365_v56 = vadd.f32 %v364_v55, %v359_v52 }
 0x52b   :  { %v366_v57 = vsel %vm329_vm6, %v365_v56, 1.0 }
 0x52c   :  { %471 = vrcp.f32 %v366_v57 }
 0x52d   :  { %473 = vlog2.f32 %v366_v57 }
 0x536   :  { %v472_v59 = vpop.eup %471 }
 0x537   :  { %v474_v60 = vpop.eup %473  ;;  %v368_v61 = vmul.f32 %v472_v59, %v353_v48 }
 0x538   :  { %v371_v62 = vmul.f32 0.6931472, %v474_v60 }
 0x539   :  { %369 = vst [vmem:[#allocation16] sm:$0xff] %v368_v61 }
 0x53a   :  { %v372_v0 = vsub.f32 %v348_v45, %v371_v62 }
 0x53c   :  { %v375_v1 = vmul.f32 %v374_v63, %v372_v0 }
 0x53e   :  { %376 = vadd.xlane.f32.xlu0 %v375_v1 }
 0x53f   :  { %662 = shalt.err (!%p659_p12)
}
 0x540   :  { %s663_s21 = scalar_lea.hbm %s930_s8, 128 }
 0x541   :  { %p664_p13 = scmp.ne.s32.totalorder %s930_s8, %s663_s21  ;;  %p667_p0 = scmp.lt.u32.totalorder %s663_s21, %s930_s8 }
 0x543   :  { %p669_p1 = pnand %p667_p0, %p664_p13 }
 0x545   :  { %672 = shalt.err (!%p669_p1)
}
 0x546   :  { %388 = dma.vmem_to_hbm [thread:$0]  %s386_s15, 128, %s930_s8, [#allocation4]  }
 0x547   :  { %s726_s18 = smov [#allocation17]  }
 0x548   :  { %s395_s16 = sshll.u32 %s726_s18, 4  ;;  %s396_s16 = int_to_ptr.vmem [resolvable:$true] %s395_s16 }
 0x549   :  { %s673_s24 = scalar_lea.vmem %s396_s16, 128  ;;  %p678_p3 = scmp.lt.s32.totalorder %s396_s16, %s396_s16 }
 0x54a   :  { %p674_p2 = scmp.ne.s32.totalorder %s396_s16, %s673_s24  ;;  %p679_p4 = scmp.lt.s32.totalorder %s673_s24, %s673_s24 }
 0x54c   :  { %p680_p5 = por %p679_p4, %p678_p3 }
 0x54e   :  { %p681_p6 = pnand %p680_p5, %p674_p2 }
 0x5cb   :  { %v377_v2 = vpop.xlane.xlu0 %376 }
 0x5cc   :  { %378 = vst [vmem:[#allocation17] sm:$0xff] %v377_v2 }
 0x5cd   :  { %684 = shalt.err (!%p681_p6)
}
 0x5ce   :  { %s685_s27 = scalar_lea.hbm %s931_s9, 128 }
 0x5cf   :  { %p686_p7 = scmp.ne.s32.totalorder %s931_s9, %s685_s27  ;;  %p689_p8 = scmp.lt.u32.totalorder %s685_s27, %s931_s9 }
 0x5d1   :  { %p691_p9 = pnand %p689_p8, %p686_p7 }
 0x5d3   :  { %694 = shalt.err (!%p691_p9)
}
 0x5d4   :  { %398 = dma.vmem_to_hbm [thread:$0]  %s396_s16, 128, %s931_s9, [#allocation18]  }
 0x5d5   :  { %705 = dma.done.wait [#allocation4], 128  }
 0x5d6   :  { %706 = vsyncadd [#allocation4], 4294967168 }
 0x5d7   :  { %707 = dma.done.wait [#allocation18], 128  }
 0x5d8   :  { %708 = vsyncadd [#allocation18], 4294967168 }
 0x5d9   :  { %405 = vsyncpa [#allocation3], 1 }
 0x5da   :  { %406 = vsyncpa [#allocation6], 1 }
 0x5db   :  { %407 = vsyncpa [#allocation9], 1 }
 0x5dc   :  { %408 = vsyncpa [#allocation12], 1 }
 0x5dd   :  { %409 = vsyncpa [#allocation15], 1 }
 0x5de   :  { %410 = vsyncpa [#allocation4], 1 }
 0x5df   :  { %411 = vsyncpa [#allocation18], 1 }

</bundles_post_ra>
